<compile_context>
chip_gen: v7x
topology: tpu7x:2x2x1
jax: 0.10.0
libtpu: 0.0.40
codegen_flags: <defaults>
</compile_context>

<pallas_src>
import functools

import jax
import jax.numpy as jnp
from jax.experimental import pallas as pl
from jax.experimental.pallas import tpu as pltpu


def _gelu_tanh(x):
    # tanh-approximate GELU: 0.5*x*(1 + tanh(sqrt(2/pi)*(x + 0.044715*x^3)))
    c = jnp.float32(0.7978845608028654)
    return 0.5 * x * (1.0 + jnp.tanh(c * (x + 0.044715 * x * x * x)))


def _round_up(n, m):
    return ((n + m - 1) // m) * m


def _target_lane_width():
    """128 lanes fills one MXU tile on v2-v5 chips; 256 on v6e/v7x."""
    try:
        kind = jax.devices()[0].device_kind.lower()
    except Exception:
        return 128
    for old in ("v2", "v3", "v4", "v5"):
        if old in kind:
            return 128
    return 256


def _mlp_res_kernel(x_ref, *args, num_layers, use_residual, use_bf16_matmul):
    """args = (w0, b0, w1, b1, ..., w_{L-1}, b_{L-1}, o_ref).

    x_ref: (TILE, fold*in_channels) folded row tile (native dtype).
    w_i:   (fold*d_in_i, fold*d_out_i) block-diagonal kron(I_fold, W_i),
           bf16 (or f32).
    b_i:   (1, fold*d_out_i) tiled bias, f32.
    """
    o_ref = args[-1]
    wb = args[:-1]

    x = x_ref[...].astype(jnp.float32)   # upcast per-tile; no host-side pass
    residual = x
    for i in range(num_layers):          # static unroll over layers
        w = wb[2 * i][...]
        b = wb[2 * i + 1][...]
        if use_bf16_matmul:
            # bf16 MXU operands, f32 accumulation (single-pass MXU).
            x = jnp.dot(x.astype(jnp.bfloat16), w,
                        preferred_element_type=jnp.float32) + b
        else:
            x = jnp.dot(x, w, preferred_element_type=jnp.float32,
                        precision=jax.lax.Precision.HIGHEST) + b
        if i < num_layers - 1:
            x = _gelu_tanh(x)                       # EUP tanh, f32 elementwise
            if use_residual and i > 0:
                # static shape check, mirrors `if x.shape == residual.shape`
                # (folded shapes match iff the original channel dims match)
                if x.shape == residual.shape:
                    x = x + residual
                residual = x
    # single full-width, lane-dense store of the final activations
    o_ref[...] = x.astype(o_ref.dtype)


def mlp_linear_res_forward(x, weights, biases, *, use_residual=False,
                           row_tile=8192, use_bf16_matmul=True):
    """Forward pass of MLPLinear_res (eval mode / dropout=0.0).

    x:       (..., in_channels) float array
    weights: list of (d_in_i, d_out_i) arrays (transposed vs torch Linear.weight)
    biases:  list of (d_out_i,) arrays
    """
    num_layers = len(weights)
    assert num_layers >= 1 and len(biases) == num_layers
    in_channels = int(weights[0].shape[0])
    out_channels = int(weights[-1].shape[1])
    assert x.shape[-1] == in_channels

    lead_shape = x.shape[:-1]
    out_dtype = x.dtype
    x_flat = x.reshape(-1, in_channels)
    N = x_flat.shape[0]

    # ---- channel-fold factor (lane density) -------------------------------
    lane_target = _target_lane_width()
    fold = max(1, lane_target // in_channels)
    # Block-diagonal weights grow as fold^2: keep the biggest folded weight small.
    dims_all = [int(w.shape[0]) for w in weights] + [out_channels]
    max_dim = max(dims_all)
    w_itemsize = 2 if use_bf16_matmul else 4
    while fold > 1 and (fold * max_dim) ** 2 * w_itemsize > (4 << 20):
        fold //= 2

    # ---- pad rows so the folded row count is a multiple of 8 (sublane) ----
    # Padded (zero) rows flow through the MLP harmlessly -- there are no
    # cross-row reductions -- and are sliced off after the call.
    pad = (-N) % (fold * 8)
    if pad:
        x_flat = jnp.pad(x_flat, ((0, pad), (0, 0)))
    n_rows = N + pad
    n_fold = n_rows // fold
    folded_in = fold * in_channels
    folded_out = fold * out_channels
    x_fold = x_flat.reshape(n_fold, folded_in)   # free: same contiguous memory

    # ---- folded-row tile ----------------------------------------------------
    tile = max(8, (row_tile // max(fold, 1)) // 8 * 8)
    tile = min(tile, n_fold)
    # Keep >=2 grid steps when there is enough work (v7x has 2 TensorCores).
    if n_fold >= 16 and pl.cdiv(n_fold, tile) < 2:
        tile = _round_up(pl.cdiv(n_fold, 2), 8)
    grid = (pl.cdiv(n_fold, tile),)

    # ---- folded weights / biases -------------------------------------------
    mm_dtype = jnp.bfloat16 if use_bf16_matmul else jnp.float32
    eye = jnp.eye(fold, dtype=mm_dtype)
    wb_args = []
    in_specs = [pl.BlockSpec((tile, folded_in), lambda i: (i, 0))]
    for w, b in zip(weights, biases):
        w_f = jnp.kron(eye, w.astype(mm_dtype))              # (fold*d_in, fold*d_out)
        b_f = jnp.tile(b.astype(jnp.float32).reshape(1, -1), (1, fold))
        wb_args += [w_f, b_f]
        in_specs.append(pl.BlockSpec(w_f.shape, lambda i: (0, 0)))
        in_specs.append(pl.BlockSpec(b_f.shape, lambda i: (0, 0)))

    kernel = functools.partial(
        _mlp_res_kernel, num_layers=num_layers, use_residual=use_residual,
        use_bf16_matmul=use_bf16_matmul,
    )

    # Advisory cost hint for XLA scheduling (actual MXU work incl. block-diag zeros).
    flops = 2 * int(n_fold) * sum(int(a.size) for a in wb_args[0::2])
    transcendentals = int(n_rows) * sum(int(w.shape[1]) for w in weights[:-1])
    bytes_accessed = (
        int(x_fold.size) * x_fold.dtype.itemsize
        + int(n_fold) * folded_out * jnp.dtype(out_dtype).itemsize
        + sum(int(a.size) * a.dtype.itemsize for a in wb_args)
    )

    out = pl.pallas_call(
        kernel,
        out_shape=jax.ShapeDtypeStruct((n_fold, folded_out), out_dtype),
        grid_spec=pltpu.PrefetchScalarGridSpec(
            num_scalar_prefetch=0,
            grid=grid,
            in_specs=in_specs,
            out_specs=pl.BlockSpec((tile, folded_out), lambda i: (i, 0)),
        ),
        compiler_params=pltpu.CompilerParams(
            dimension_semantics=("parallel",),
            # Explicit scoped-VMEM budget: raises v5e's 16 MiB default, matches
            # the v6e/v7x defaults, and the working set (~12 MiB at the default
            # tile) stays well inside v7x's 64 MiB physical VMEM.
            vmem_limit_bytes=32 * 1024 * 1024,
        ),
        cost_estimate=pl.CostEstimate(
            flops=flops,
            transcendentals=transcendentals,
            bytes_accessed=bytes_accessed,
        ),
    )(x_fold, *wb_args)

    out = out.reshape(n_rows, out_channels)
    if pad:
        out = out[:N]
    return out.reshape(*lead_shape, out_channels)


def _reference(x, weights, biases, *, use_residual, use_bf16_matmul=True):
    """Pure-JAX reference mirroring MLPLinear_res.forward (eval mode)."""
    num_layers = len(weights)
    x = x.astype(jnp.float32)
    residual = x
    for i, (w, b) in enumerate(zip(weights, biases)):
        if use_bf16_matmul:
            x = jnp.dot(x.astype(jnp.bfloat16), w.astype(jnp.bfloat16),
                        preferred_element_type=jnp.float32) + b.astype(jnp.float32)
        else:
            x = jnp.dot(x, w, precision=jax.lax.Precision.HIGHEST) + b
        if i < num_layers - 1:
            x = _gelu_tanh(x)
            if use_residual and i > 0:
                if x.shape == residual.shape:
                    x = x + residual
                residual = x
    return x


if __name__ == "__main__":
    # Module hyperparameters (small, deterministic):
    #   MLPLinear_res(in_channels=32, out_channels=32, hidden_channels=32,
    #                 num_layers=3, non_linearity=gelu, dropout=0.0,
    #                 use_residual=True)
    in_channels = 32
    hidden_channels = 32
    out_channels = 32
    num_layers = 3
    use_residual = True

    # Layer dims follow the module's construction.
    if num_layers == 1:
        dims = [in_channels, out_channels]
    else:
        dims = [in_channels] + [hidden_channels] * (num_layers - 1) + [out_channels]

    key = jax.random.PRNGKey(0)
    keys = jax.random.split(key, 2 * num_layers + 2)

    weights, biases = [], []
    for li in range(num_layers):
        din, dout = dims[li], dims[li + 1]
        bound = 1.0 / (din ** 0.5)  # nn.Linear default init range
        w = jax.random.uniform(keys[2 * li], (din, dout), jnp.float32,
                               -bound, bound)
        b = jax.random.uniform(keys[2 * li + 1], (dout,), jnp.float32,
                               -bound, bound)
        weights.append(w)
        biases.append(b)

    # Small example input: (batch=2, seq=128, in_channels=32)
    x = jax.random.normal(keys[-2], (2, 128, in_channels), jnp.float32)

    out = mlp_linear_res_forward(x, weights, biases, use_residual=use_residual)
    out = jax.block_until_ready(out)
    assert out.shape == (2, 128, out_channels)

    # Tight check vs a reference with the same matmul dtype policy
    # (verifies the folding / residual / GELU logic).
    ref_bf16 = _reference(x, weights, biases, use_residual=use_residual,
                          use_bf16_matmul=True)
    assert jnp.allclose(out, ref_bf16, atol=1e-2, rtol=1e-2)

    # Loose sanity check vs a full-f32 (HIGHEST precision) reference.
    ref_f32 = _reference(x, weights, biases, use_residual=use_residual,
                         use_bf16_matmul=False)
    assert jnp.allclose(out, ref_f32, atol=5e-2, rtol=5e-2)

    # Second shape exercising the row-padding / multi-step-grid path (N=111).
    x2 = jax.random.normal(keys[-1], (3, 37, in_channels), jnp.float32)
    out2 = mlp_linear_res_forward(x2, weights, biases, use_residual=use_residual)
    out2 = jax.block_until_ready(out2)
    ref2 = _reference(x2, weights, biases, use_residual=use_residual,
                      use_bf16_matmul=True)
    assert out2.shape == (3, 37, out_channels)
    assert jnp.allclose(out2, ref2, atol=1e-2, rtol=1e-2)

    print("KERNEL_OK")
</pallas_src>

<mosaic_0001>
module attributes {stable_mosaic.version = 11 : i64} {
  func.func @_mlp_res_kernel(%arg0: i32, %arg1: memref<16x256xf32, #tpu.memory_space<vmem>>, %arg2: memref<256x256xbf16, #tpu.memory_space<vmem>>, %arg3: memref<1x256xf32, #tpu.memory_space<vmem>>, %arg4: memref<256x256xbf16, #tpu.memory_space<vmem>>, %arg5: memref<1x256xf32, #tpu.memory_space<vmem>>, %arg6: memref<256x256xbf16, #tpu.memory_space<vmem>>, %arg7: memref<1x256xf32, #tpu.memory_space<vmem>>, %arg8: memref<16x256xf32, #tpu.memory_space<vmem>>) attributes {dimension_semantics = [#tpu.dimension_semantics<parallel>], iteration_bounds = array<i64: 2>, scalar_prefetch = 0 : i64, scratch_operands = 0 : i64, tpu.core_type = #tpu.core_type<tc>, window_params = [{transform_indices = @transform_0, window_bounds = array<i64: 16, 256>}, {pipeline_mode = #tpu.pipeline_mode<synchronous>, transform_indices = @transform_1, window_bounds = array<i64: 256, 256>}, {pipeline_mode = #tpu.pipeline_mode<synchronous>, transform_indices = @transform_2, window_bounds = array<i64: 1, 256>}, {pipeline_mode = #tpu.pipeline_mode<synchronous>, transform_indices = @transform_3, window_bounds = array<i64: 256, 256>}, {pipeline_mode = #tpu.pipeline_mode<synchronous>, transform_indices = @transform_4, window_bounds = array<i64: 1, 256>}, {pipeline_mode = #tpu.pipeline_mode<synchronous>, transform_indices = @transform_5, window_bounds = array<i64: 256, 256>}, {pipeline_mode = #tpu.pipeline_mode<synchronous>, transform_indices = @transform_6, window_bounds = array<i64: 1, 256>}, {transform_indices = @transform_7, window_bounds = array<i64: 16, 256>}]} {
    %c0 = arith.constant 0 : index
    %c0_0 = arith.constant 0 : index
    %0 = vector.load %arg1[%c0, %c0_0] : memref<16x256xf32, #tpu.memory_space<vmem>>, vector<16x256xf32>
    %c0_1 = arith.constant 0 : index
    %c0_2 = arith.constant 0 : index
    %1 = vector.load %arg2[%c0_1, %c0_2] : memref<256x256xbf16, #tpu.memory_space<vmem>>, vector<256x256xbf16>
    %c0_3 = arith.constant 0 : index
    %c0_4 = arith.constant 0 : index
    %2 = vector.load %arg3[%c0_3, %c0_4] : memref<1x256xf32, #tpu.memory_space<vmem>>, vector<1x256xf32>
    %3 = arith.truncf %0 : vector<16x256xf32> to vector<16x256xbf16>
    %cst = arith.constant dense<0.000000e+00> : vector<16x256xf32>
    %4 = tpu.matmul %3, %1, %cst {dimension_numbers = #tpu.dot_dimension_numbers<[1], [0], [0], [1], [0, 0, 1, 1], [], []>} : vector<16x256xbf16>, vector<256x256xbf16>, vector<16x256xf32> -> vector<16x256xf32>
    %5 = vector.broadcast %2 : vector<1x256xf32> to vector<16x256xf32>
    %6 = arith.addf %4, %5 : vector<16x256xf32>
    %cst_5 = arith.constant 5.000000e-01 : f32
    %7 = vector.broadcast %cst_5 : f32 to vector<16x256xf32>
    %8 = arith.mulf %7, %6 : vector<16x256xf32>
    %cst_6 = arith.constant 4.471500e-02 : f32
    %9 = vector.broadcast %cst_6 : f32 to vector<16x256xf32>
    %10 = arith.mulf %9, %6 : vector<16x256xf32>
    %11 = arith.mulf %10, %6 : vector<16x256xf32>
    %12 = arith.mulf %11, %6 : vector<16x256xf32>
    %13 = arith.addf %6, %12 : vector<16x256xf32>
    %cst_7 = arith.constant 0.797884583 : f32
    %14 = vector.broadcast %cst_7 : f32 to vector<16x256xf32>
    %15 = arith.mulf %14, %13 : vector<16x256xf32>
    %16 = math.tanh %15 : vector<16x256xf32>
    %cst_8 = arith.constant 1.000000e+00 : f32
    %17 = vector.broadcast %cst_8 : f32 to vector<16x256xf32>
    %18 = arith.addf %17, %16 : vector<16x256xf32>
    %19 = arith.mulf %8, %18 : vector<16x256xf32>
    %c0_9 = arith.constant 0 : index
    %c0_10 = arith.constant 0 : index
    %20 = vector.load %arg4[%c0_9, %c0_10] : memref<256x256xbf16, #tpu.memory_space<vmem>>, vector<256x256xbf16>
    %c0_11 = arith.constant 0 : index
    %c0_12 = arith.constant 0 : index
    %21 = vector.load %arg5[%c0_11, %c0_12] : memref<1x256xf32, #tpu.memory_space<vmem>>, vector<1x256xf32>
    %22 = arith.truncf %19 : vector<16x256xf32> to vector<16x256xbf16>
    %cst_13 = arith.constant dense<0.000000e+00> : vector<16x256xf32>
    %23 = tpu.matmul %22, %20, %cst_13 {dimension_numbers = #tpu.dot_dimension_numbers<[1], [0], [0], [1], [0, 0, 1, 1], [], []>} : vector<16x256xbf16>, vector<256x256xbf16>, vector<16x256xf32> -> vector<16x256xf32>
    %24 = vector.broadcast %21 : vector<1x256xf32> to vector<16x256xf32>
    %25 = arith.addf %23, %24 : vector<16x256xf32>
    %cst_14 = arith.constant 5.000000e-01 : f32
    %26 = vector.broadcast %cst_14 : f32 to vector<16x256xf32>
    %27 = arith.mulf %26, %25 : vector<16x256xf32>
    %cst_15 = arith.constant 4.471500e-02 : f32
    %28 = vector.broadcast %cst_15 : f32 to vector<16x256xf32>
    %29 = arith.mulf %28, %25 : vector<16x256xf32>
    %30 = arith.mulf %29, %25 : vector<16x256xf32>
    %31 = arith.mulf %30, %25 : vector<16x256xf32>
    %32 = arith.addf %25, %31 : vector<16x256xf32>
    %cst_16 = arith.constant 0.797884583 : f32
    %33 = vector.broadcast %cst_16 : f32 to vector<16x256xf32>
    %34 = arith.mulf %33, %32 : vector<16x256xf32>
    %35 = math.tanh %34 : vector<16x256xf32>
    %cst_17 = arith.constant 1.000000e+00 : f32
    %36 = vector.broadcast %cst_17 : f32 to vector<16x256xf32>
    %37 = arith.addf %36, %35 : vector<16x256xf32>
    %38 = arith.mulf %27, %37 : vector<16x256xf32>
    %39 = arith.addf %38, %0 : vector<16x256xf32>
    %c0_18 = arith.constant 0 : index
    %c0_19 = arith.constant 0 : index
    %40 = vector.load %arg6[%c0_18, %c0_19] : memref<256x256xbf16, #tpu.memory_space<vmem>>, vector<256x256xbf16>
    %c0_20 = arith.constant 0 : index
    %c0_21 = arith.constant 0 : index
    %41 = vector.load %arg7[%c0_20, %c0_21] : memref<1x256xf32, #tpu.memory_space<vmem>>, vector<1x256xf32>
    %42 = arith.truncf %39 : vector<16x256xf32> to vector<16x256xbf16>
    %cst_22 = arith.constant dense<0.000000e+00> : vector<16x256xf32>
    %43 = tpu.matmul %42, %40, %cst_22 {dimension_numbers = #tpu.dot_dimension_numbers<[1], [0], [0], [1], [0, 0, 1, 1], [], []>} : vector<16x256xbf16>, vector<256x256xbf16>, vector<16x256xf32> -> vector<16x256xf32>
    %44 = vector.broadcast %41 : vector<1x256xf32> to vector<16x256xf32>
    %45 = arith.addf %43, %44 : vector<16x256xf32>
    %c0_23 = arith.constant 0 : index
    %c0_24 = arith.constant 0 : index
    %46 = vector.load %arg8[%c0_23, %c0_24] : memref<16x256xf32, #tpu.memory_space<vmem>>, vector<16x256xf32>
    tpu.vector_store %arg8[%c0_23, %c0_24], %45 {strides = array<i32>} : memref<16x256xf32, #tpu.memory_space<vmem>>, vector<16x256xf32>,
    return
  }
  func.func @transform_0(%arg0: i32) -> (i32, i32) {
    %c0_i32 = arith.constant 0 : i32
    %c0_i32_0 = arith.constant 0 : i32
    return %arg0, %c0_i32 : i32, i32
  }
  func.func @transform_1(%arg0: i32) -> (i32, i32) {
    %c0_i32 = arith.constant 0 : i32
    %c0_i32_0 = arith.constant 0 : i32
    %c0_i32_1 = arith.constant 0 : i32
    return %c0_i32, %c0_i32_0 : i32, i32
  }
  func.func @transform_2(%arg0: i32) -> (i32, i32) {
    %c0_i32 = arith.constant 0 : i32
    %c0_i32_0 = arith.constant 0 : i32
    %c0_i32_1 = arith.constant 0 : i32
    return %c0_i32, %c0_i32_0 : i32, i32
  }
  func.func @transform_3(%arg0: i32) -> (i32, i32) {
    %c0_i32 = arith.constant 0 : i32
    %c0_i32_0 = arith.constant 0 : i32
    %c0_i32_1 = arith.constant 0 : i32
    return %c0_i32, %c0_i32_0 : i32, i32
  }
  func.func @transform_4(%arg0: i32) -> (i32, i32) {
    %c0_i32 = arith.constant 0 : i32
    %c0_i32_0 = arith.constant 0 : i32
    %c0_i32_1 = arith.constant 0 : i32
    return %c0_i32, %c0_i32_0 : i32, i32
  }
  func.func @transform_5(%arg0: i32) -> (i32, i32) {
    %c0_i32 = arith.constant 0 : i32
    %c0_i32_0 = arith.constant 0 : i32
    %c0_i32_1 = arith.constant 0 : i32
    return %c0_i32, %c0_i32_0 : i32, i32
  }
  func.func @transform_6(%arg0: i32) -> (i32, i32) {
    %c0_i32 = arith.constant 0 : i32
    %c0_i32_0 = arith.constant 0 : i32
    %c0_i32_1 = arith.constant 0 : i32
    return %c0_i32, %c0_i32_0 : i32, i32
  }
  func.func @transform_7(%arg0: i32) -> (i32, i32) {
    %c0_i32 = arith.constant 0 : i32
    %c0_i32_0 = arith.constant 0 : i32
    return %arg0, %c0_i32 : i32, i32
  }
}

</mosaic_0001>

<bundles_post_ra>
// kernel: tpu_custom_call.1
= control target key start
LH: loop header
LB: loop body
LE: loop exit
PB: predicated region body
PF: predicated region fallthrough
CT: control target
= control target key end

     0   :  { %12 = vsyncpa [#allocation3], 0  ;;  %s2211_s0 = inlined_call_operand.hbm [shape: f32[32,256], index: 0, kind: input, shape index: {}]   ;;  %s2212_s1 = inlined_call_operand.hbm [shape: bf16[256,256], index: 1, kind: input, shape index: {}]   ;;  %s2213_s2 = inlined_call_operand.vmem [shape: f32[1,256], index: 2, kind: input, shape index: {}]   ;;  %s2214_s3 = inlined_call_operand.hbm [shape: bf16[256,256], index: 3, kind: input, shape index: {}]   ;;  %s2215_s4 = inlined_call_operand.vmem [shape: f32[1,256], index: 4, kind: input, shape index: {}]   ;;  %s2216_s5 = inlined_call_operand.hbm [shape: bf16[256,256], index: 5, kind: input, shape index: {}]   ;;  %s2217_s6 = inlined_call_operand.vmem [shape: f32[1,256], index: 6, kind: input, shape index: {}]   ;;  %s2218_s7 = inlined_call_operand.hbm [shape: f32[32,256], index: 7, kind: output, shape index: {}]  }
   0x1   :  { %14 = vsyncpa [#allocation3 + $0x1], 0 }
   0x2   :  { %15 = vsyncpa [#allocation6], 0 }
   0x3   :  { %16 = vsyncpa [#allocation9], 0 }
   0x4   :  { %17 = vsyncpa [#allocation4], 0 }
   0x5   :  { %19 = vsyncpa [#allocation4 + $0x1], 0  ;;  %s1898_s24 = smov 0   ;;  %s1900_s25 = smov 0  }
   0x6   :  { %s1902_s26 = smov 0   ;;  %s1904_s27 = smov 0  }
   0x7 LB: > { %s1919_s28 = sadd.s32 4294967295, %s1845_s27   ;;  %s1292_s29 = sadd.s32 4294967294, %s1845_s27   ;;  %s1845_s27 = sphi %s1904_s27, %s2244_s27   ;;  %s1841_s26 = sphi %s1902_s26, %s2243_s26   ;;  %s1837_s25 = sphi %s1900_s25, %s2242_s25   ;;  %s1833_s24 = sphi %s1898_s24, %s2241_s24  }
   0x8   : > { %p45_p0 = scmp.ne.s32.totalorder %s1837_s25, %s1833_s24  ;;  %p2219_p1 = scmp.eq.s32.totalorder %s1919_s28, 0 }
   0x9   : > { %p201_p3 = scmp.eq.s32.totalorder %s1292_s29, 1  ;;  %p1293_p5 = scmp.ge.s32.totalorder %s1845_s27, 1 }
   0xa   : > { %p1928_p4 = por %p2219_p1, %p45_p0  ;;  %p208_p7 = scmp.lt.s32.totalorder %s1845_s27, 3 }
   0xb   : > { %p1933_p6 = por %p201_p3, %p45_p0  ;;  %s1847_s10 = smov [#allocation5]  }
   0xc   : > { %s2223_s30 = scalar_select %p1928_p4, 1, 0 }
   0xd   : > { %s2224_s8 = scalar_select %p1933_p6, 1, 0 }
   0xe   : > { %p1938_p8 = pnand %p1293_p5, %p208_p7  ;;  %s220_s11 = sshll.u32 %s1847_s10, 4  ;;  %s1942_s11 = int_to_ptr.vmem [resolvable:$true] %s220_s11 }
   0xf   : > { %2225 = sst [smem:[#allocation15_spill]] %s2224_s8  ;;  %s1848_s13 = smov [#allocation7]  }
  0x10   : > { %s2226_s9 = scalar_select %p1938_p8, 1, 0 }
  0x11   : > { %p1430_p9 = pneg %p1938_p8  ;;  %s236_s14 = sshll.u32 %s1848_s13, 4  ;;  %s1953_s14 = int_to_ptr.vmem [resolvable:$true] %s236_s14 }
  0x12   : > { %s1849_s15 = smov [#allocation8]   ;;  %s1657_s19 = scalar_lea.hbm %s2212_s1, 4096 }
  0x13   : > { %p1949_p11 = pnand %p1430_p9, %p2219_p1  ;;  %s1955_s16 = sshll.u32 %s1849_s15, 4  ;;  %s253_s16 = int_to_ptr.vmem [resolvable:$true] %s1955_s16 }
  0x14   : > { %p1658_p12 = scmp.ne.s32.totalorder %s2212_s1, %s1657_s19  ;;  %p1664_p5 = scmp.lt.u32.totalorder %s1657_s19, %s2212_s1 }
  0x15   : > { %p1965_p13 = pneg %p1949_p11 }
  0x17   : > { %p1660_p0 = pnand %p1965_p13, %p1658_p12 }
  0x19   : > { %p1661_p3 = pneg %p1660_p0 }
  0x1b   : > { %p1666_p7 = pnand %p1664_p5, %p1661_p3 }
  0x1d   : > { %1669 = shalt.err (!%p1666_p7)
}
  0x1e   : > { %s1670_s10 = scalar_lea.vmem %s1942_s11, 4096  ;;  %p1678_p2 = scmp.lt.s32.totalorder %s1942_s11, %s1942_s11 }
  0x1f   : > { %p1671_p9 = scmp.ne.s32.totalorder %s1942_s11, %s1670_s10  ;;  %p1679_p6 = scmp.lt.s32.totalorder %s1670_s10, %s1670_s10 }
  0x21   : > { %p1673_p10 = pnand %p1671_p9, %p1965_p13  ;;  %p1680_p12 = por %p1679_p6, %p1678_p2 }
  0x23   : > { %p1674_p1 = pneg %p1673_p10 }
  0x25   : > { %p1681_p0 = pnand %p1680_p12, %p1674_p1 }
  0x27   : > { %1684 = shalt.err (!%p1681_p0)
}
  0x28   : > { %s1850_s13 = smov 128   ;;  %s1851_s15 = smov 8  }
  0x29   : > { %1433 = dma.hbm_to_vmem [thread:$0]  (!%p1949_p11), %s2212_s1, 4096, %s1942_s11, [#allocation6], %s1850_s13, %s1850_s13, %s1851_s15  }
  0x2a   : > { %s1685_s21 = scalar_lea.hbm %s2214_s3, 4096 }
  0x2b   : > { %p1686_p1 = scmp.ne.s32.totalorder %s2214_s3, %s1685_s21  ;;  %p1692_p10 = scmp.lt.u32.totalorder %s1685_s21, %s2214_s3 }
  0x2d   : > { %p1688_p2 = pnand %p1686_p1, %p1965_p13 }
  0x2f   : > { %p1689_p6 = pneg %p1688_p2 }
  0x31   : > { %p1694_p3 = pnand %p1692_p10, %p1689_p6 }
  0x33   : > { %1697 = shalt.err (!%p1694_p3)
}
  0x34   : > { %s1698_s11 = scalar_lea.vmem %s1953_s14, 4096  ;;  %p1706_p12 = scmp.lt.s32.totalorder %s1953_s14, %s1953_s14 }
  0x35   : > { %p1699_p5 = scmp.ne.s32.totalorder %s1953_s14, %s1698_s11  ;;  %p1707_p0 = scmp.lt.s32.totalorder %s1698_s11, %s1698_s11 }
  0x37   : > { %p1701_p7 = pnand %p1699_p5, %p1965_p13  ;;  %p1708_p1 = por %p1707_p0, %p1706_p12 }
  0x39   : > { %p1702_p9 = pneg %p1701_p7 }
  0x3b   : > { %p1709_p2 = pnand %p1708_p1, %p1702_p9 }
  0x3d   : > { %1712 = shalt.err (!%p1709_p2)
}
  0x3e   : > { %1436 = dma.hbm_to_vmem [thread:$0]  (!%p1949_p11), %s2214_s3, 4096, %s1953_s14, [#allocation6], %s1850_s13, %s1850_s13, %s1851_s15  }
  0x3f   : > { %s1713_s20 = scalar_lea.hbm %s2216_s5, 4096 }
  0x40   : > { %p1714_p6 = scmp.ne.s32.totalorder %s2216_s5, %s1713_s20  ;;  %p1720_p5 = scmp.lt.u32.totalorder %s1713_s20, %s2216_s5 }
  0x42   : > { %p1716_p10 = pnand %p1714_p6, %p1965_p13 }
  0x44   : > { %p1717_p3 = pneg %p1716_p10 }
  0x46   : > { %p1722_p7 = pnand %p1720_p5, %p1717_p3 }
  0x48   : > { %1725 = shalt.err (!%p1722_p7)
}
  0x49   : > { %s1726_s11 = scalar_lea.vmem %s253_s16, 4096  ;;  %p1734_p1 = scmp.lt.s32.totalorder %s253_s16, %s253_s16 }
  0x4a   : > { %p1727_p9 = scmp.ne.s32.totalorder %s253_s16, %s1726_s11  ;;  %p1735_p2 = scmp.lt.s32.totalorder %s1726_s11, %s1726_s11 }
  0x4c   : > { %p1729_p12 = pnand %p1727_p9, %p1965_p13  ;;  %p1736_p4 = por %p1735_p2, %p1734_p1 }
  0x4e   : > { %p1730_p0 = pneg %p1729_p12 }
  0x50   : > { %p1737_p8 = pnand %p1736_p4, %p1730_p0 }
  0x52   : > { %1740 = shalt.err (!%p1737_p8)
}
  0x53   : > { %1439 = dma.hbm_to_vmem [thread:$0]  (!%p1949_p11), %s2216_s5, 4096, %s253_s16, [#allocation9], %s1850_s13, %s1850_s13, %s1851_s15  }
  0x54   : > { %s2038_s22 = sadd.s32 1, %s1845_s27   ;;  %s32_s17 = sadd.s32 1, %s1841_s26 }
  0x55   : > { %s29_s12 = ssub.s32 %s1845_s27, %s2038_s22  ;;  %p39_p8 = scmp.ne.s32.totalorder %s1841_s26, %s1837_s25 }
  0x56   : > { %p30_p4 = scmp.eq.s32.totalorder %s29_s12, 0  ;;  %p40_p13 = scmp.eq.s32.totalorder %s1845_s27, 0 }
  0x57   : > { %p1451_p6 = scmp.lt.s32.totalorder %s1845_s27, 2  ;;  %p2229_p3 = scmp.eq.s32.totalorder %s1919_s28, 1 }
  0x58   : > { %s2048_s18 = scalar_select %p30_p4, %s1841_s26, %s32_s17  }
  0x59   : > { %p41_p10 = por %p40_p13, %p39_p8  ;;  %p2052_p5 = por %p2229_p3, %p39_p8 }
  0x5a   : > { %s269_s20 = sand.u32 1, %s1841_s26   ;;  %s1411_s21 = sshll.u32 %s1845_s27, 9 }
  0x5b   : > { %s1298_s16 = sshll.u32 %s269_s20, 5  ;;  %s2061_s23 = scalar_lea.hbm %s2211_s0, %s1411_s21 }
  0x5c   : > { %s273_s29 = scalar_lea.vmem [#allocation2], %s1298_s16  ;;  %p2063_p11 = pnand %p1451_p6, %p41_p10 }
  0x5d   : > { %s281_s10 = sshll.u32 %s273_s29, 4  ;;  %s2069_s14 = scalar_lea.sflag [#allocation3], %s269_s20  ;;  %s2067_s10 = int_to_ptr.vmem [resolvable:$true] %s281_s10 }
  0x5e   : > { %s1741_s8 = scalar_lea.hbm %s2061_s23, 512  ;;  %p1743_p9 = pneg %p2063_p11 }
  0x5f   : > { %p1742_p7 = scmp.ne.s32.totalorder %s2061_s23, %s1741_s8  ;;  %s1746_s21 = scalar_lea.hbm %s2211_s0, 1024 }
  0x60   : > { %p1747_p1 = scmp.lt.u32.totalorder %s2061_s23, %s2211_s0  ;;  %p1748_p2 = scmp.lt.u32.totalorder %s1746_s21, %s1741_s8 }
  0x61   : > { %p1744_p12 = pnand %p1743_p9, %p1742_p7  ;;  %p1750_p8 = scmp.lt.u32.totalorder %s1741_s8, %s2061_s23 }
  0x62   : > { %p1749_p4 = por %p1748_p2, %p1747_p1 }
  0x63   : > { %p1745_p0 = pneg %p1744_p12 }
  0x64   : > { %p1751_p13 = por %p1750_p8, %p1749_p4 }
  0x66   : > { %p1752_p6 = pnand %p1751_p13, %p1745_p0 }
  0x68   : > { %1755 = shalt.err (!%p1752_p6)
}
  0x69   : > { %s1756_s20 = scalar_lea.vmem %s2067_s10, 512  ;;  %s1852_s15 = smov [#allocation2]  }
  0x6a   : > { %p1757_p10 = scmp.ne.s32.totalorder %s2067_s10, %s1756_s20  ;;  %s1761_s29 = sshll.u32 %s1852_s15, 4  ;;  %s1762_s29 = int_to_ptr.vmem [resolvable:$false] %s1761_s29 }
  0x6b   : > { %s1763_s12 = scalar_lea.vmem %s1762_s29, 1024  ;;  %p1764_p12 = scmp.lt.s32.totalorder %s2067_s10, %s1762_s29 }
  0x6c   : > { %p1759_p3 = pnand %p1757_p10, %p1743_p9  ;;  %p1765_p1 = scmp.lt.s32.totalorder %s1763_s12, %s1756_s20 }
  0x6e   : > { %p1760_p7 = pneg %p1759_p3  ;;  %p1766_p2 = por %p1765_p1, %p1764_p12 }
  0x70   : > { %p1767_p4 = pnand %p1766_p2, %p1760_p7 }
  0x72   : > { %1770 = shalt.err (!%p1767_p4)
}
  0x73   : > { %s1853_s8 = smov 256   ;;  %s1854_s17 = smov 16  }
  0x74   : > { %1443 = dma.hbm_to_vmem [thread:$0]  (!%p2063_p11), %s2061_s23, 512, %s2067_s10, %s2069_s14, %s1853_s8, %s1853_s8, %s1854_s17  }
  0x75   : > { %p2232_p9 = scmp.ne.s32.totalorder %s2226_s9, 0 }
  0x76   : > { %s2100_s21 = sand.u32 (!%p2232_p9), 1, %s1837_s25   ;;  %p2233_p0 = scmp.ne.s32.totalorder (!%p2232_p9), %s2223_s30, 0 }
  0x77   : > { %293 = sbr.rel (%p2232_p9) target bundleno = 923 (0x39b), region = 48  ;;  %s1303_s16 = sshll.u32 (!%p2232_p9), %s2100_s21, 5 }
  0x78   : > { %s296_s13 = scalar_lea.sflag (!%p2232_p9), [#allocation3], %s2100_s21  ;;  %s2106_s20 = scalar_lea.vmem (!%p2232_p9), [#allocation2], %s1303_s16 }
  0x7e   : > { %1816 = dma.done.wait (%p2233_p0), %s296_s13, 512  }
  0x7f   : > { %1818 = vsyncadd (%p2233_p0), %s296_s13, 4294966784  ;;  %p2234_p11 = scmp.eq.s32.totalorder %s1919_s28, 0 }
  0x81   : > { %1820 = dma.done.wait (%p2234_p11), [#allocation6], 8192   ;;  %p2235_p8 = pmov %p2234_p11 }
  0x83   : > { %1822 = vsyncadd (%p2235_p8), [#allocation6], 4294959104  ;;  %p2236_p13 = pmov %p2235_p8 }
  0x84   : > { %p2237_p6 = pmov %p2235_p8 }
  0x85   : > { %1824 = dma.done.wait (%p2236_p13), [#allocation9], 4096  }
  0x86   : > { %1826 = vsyncadd (%p2237_p6), [#allocation9], 4294963200  ;;  %v1497_v0 = vld [vmem:[#allocation5 + $0x4] ss:$8 sps:$4 sm:$0xff]   ;;  %v1499_v1 = vld [vmem:[#allocation5] ss:$8 sps:$4 sm:$0xff]  }
  0x87   : > { %554 = vmatprep.subr.bf16.mxu0 %v1497_v0  ;;  %v1500_v2 = vld [vmem:[#allocation5 + $0x14] ss:$8 sps:$4 sm:$0xff]   ;;  %v1502_v3 = vld [vmem:[#allocation5 + $0x10] ss:$8 sps:$4 sm:$0xff]   ;;  %v1503_v4 = vld [vmem:[#allocation5 + $0x24] ss:$8 sps:$4 sm:$0xff]  }
  0x88   : > { %555 = vmatpush1.bf16.msra.mxu0 %v1499_v1  ;;  %v1505_v5 = vld [vmem:[#allocation5 + $0x20] ss:$8 sps:$4 sm:$0xff]   ;;  %v1506_v6 = vld [vmem:[#allocation5 + $0x34] ss:$8 sps:$4 sm:$0xff]   ;;  %v1508_v7 = vld [vmem:[#allocation5 + $0x30] ss:$8 sps:$4 sm:$0xff]  }
  0x89   : > { %556 = vmatprep.subr.bf16.mxu0 %v1500_v2  ;;  %v1509_v8 = vld [vmem:[#allocation5 + $0x44] ss:$8 sps:$4 sm:$0xff]   ;;  %v1511_v9 = vld [vmem:[#allocation5 + $0x40] ss:$8 sps:$4 sm:$0xff]   ;;  %v1512_v10 = vld [vmem:[#allocation5 + $0x54] ss:$8 sps:$4 sm:$0xff]  }
  0x8a   : > { %v1514_v11 = vld [vmem:[#allocation5 + $0x50] ss:$8 sps:$4 sm:$0xff]   ;;  %v1515_v12 = vld [vmem:[#allocation5 + $0x64] ss:$8 sps:$4 sm:$0xff]   ;;  %v1517_v15 = vld [vmem:[#allocation5 + $0x60] ss:$8 sps:$4 sm:$0xff]  }
  0x8b   : > { %v2121_v13 = vld [vmem:[%s2106_s20 + $0x8] sm:$0xff]  ;;  %v2124_v14 = vld [vmem:[%s2106_s20 + $0x18] sm:$0xff]  ;;  %v2129_v51 = vld [vmem:[%s2106_s20] sm:$0xff]  ;;  %s341_s15 = scalar_lea.vmem [#allocation10], %s1303_s16  ;;  %s1413_s12 = sshll.u32 %s1919_s28, 9 }
  0x8c   : > { %557 = vmatpush1.bf16.msra.mxu0 %v1502_v3  ;;  %v1518_v16 = vld [vmem:[#allocation5 + $0x74] ss:$8 sps:$4 sm:$0xff]   ;;  %v382_v17 = vpack.c.bf16 %v2124_v14, %v2121_v13  ;;  %v1545_v18 = vld [vmem:[#allocation7 + $0x4] ss:$8 sps:$4 sm:$0xff]   ;;  %v1547_v19 = vld [vmem:[#allocation7] ss:$8 sps:$4 sm:$0xff]   ;;  %s2167_s16 = scalar_lea.hbm %s2218_s7, %s1413_s12 }
  0x8d   : > { %558 = vmatprep.subr.bf16.mxu0 %v1503_v4  ;;  %v1548_v20 = vld [vmem:[#allocation7 + $0x14] ss:$8 sps:$4 sm:$0xff]   ;;  %839 = vmatprep.subr.bf16.mxu1 %v1545_v18  ;;  %v1550_v21 = vld [vmem:[#allocation7 + $0x10] ss:$8 sps:$4 sm:$0xff]   ;;  %v1551_v23 = vld [vmem:[#allocation7 + $0x24] ss:$8 sps:$4 sm:$0xff]  }
  0x8e   : > { %586 = vmatprep.mubr.bf16.mxu0 %v382_v17  ;;  %840 = vmatpush1.bf16.msra.mxu1 %v1547_v19  ;;  %v1520_v22 = vld [vmem:[#allocation5 + $0x70] ss:$8 sps:$4 sm:$0xff]   ;;  %v1521_v24 = vld [vmem:[#allocation5 + $0x84] ss:$8 sps:$4 sm:$0xff]   ;;  %v1553_v25 = vld [vmem:[#allocation7 + $0x20] ss:$8 sps:$4 sm:$0xff]  }
  0x8f   : > { %841 = vmatprep.subr.bf16.mxu1 %v1548_v20  ;;  %v1523_v26 = vld [vmem:[#allocation5 + $0x80] ss:$8 sps:$4 sm:$0xff]   ;;  %v1554_v27 = vld [vmem:[#allocation7 + $0x34] ss:$8 sps:$4 sm:$0xff]   ;;  %v1526_v29 = vld [vmem:[#allocation5 + $0x90] ss:$8 sps:$4 sm:$0xff]  }
  0x90   : > { %559 = vmatpush1.bf16.msra.mxu0 %v1505_v5  ;;  %v1524_v28 = vld [vmem:[#allocation5 + $0x94] ss:$8 sps:$4 sm:$0xff]   ;;  %v1556_v30 = vld [vmem:[#allocation7 + $0x30] ss:$8 sps:$4 sm:$0xff]   ;;  %v1557_v31 = vld [vmem:[#allocation7 + $0x44] ss:$8 sps:$4 sm:$0xff]  }
  0x91   : > { %560 = vmatprep.subr.bf16.mxu0 %v1506_v6  ;;  %v1527_v32 = vld [vmem:[#allocation5 + $0xa4] ss:$8 sps:$4 sm:$0xff]   ;;  %v1559_v33 = vld [vmem:[#allocation7 + $0x40] ss:$8 sps:$4 sm:$0xff]   ;;  %v1560_v35 = vld [vmem:[#allocation7 + $0x54] ss:$8 sps:$4 sm:$0xff]  }
  0x92   : > { %842 = vmatpush1.bf16.msra.mxu1 %v1550_v21  ;;  %v1529_v34 = vld [vmem:[#allocation5 + $0xa0] ss:$8 sps:$4 sm:$0xff]   ;;  %v1530_v36 = vld [vmem:[#allocation5 + $0xb4] ss:$8 sps:$4 sm:$0xff]   ;;  %v1562_v37 = vld [vmem:[#allocation7 + $0x50] ss:$8 sps:$4 sm:$0xff]  }
  0x93   : > { %843 = vmatprep.subr.bf16.mxu1 %v1551_v23  ;;  %v1532_v38 = vld [vmem:[#allocation5 + $0xb0] ss:$8 sps:$4 sm:$0xff]   ;;  %v1563_v39 = vld [vmem:[#allocation7 + $0x64] ss:$8 sps:$4 sm:$0xff]   ;;  %v1565_v41 = vld [vmem:[#allocation7 + $0x60] ss:$8 sps:$4 sm:$0xff]  }
  0x94   : > { %561 = vmatpush1.bf16.msra.mxu0 %v1508_v7  ;;  %v1533_v40 = vld [vmem:[#allocation5 + $0xc4] ss:$8 sps:$4 sm:$0xff]   ;;  %v1535_v42 = vld [vmem:[#allocation5 + $0xc0] ss:$8 sps:$4 sm:$0xff]   ;;  %v1566_v43 = vld [vmem:[#allocation7 + $0x74] ss:$8 sps:$4 sm:$0xff]  }
  0x95   : > { %562 = vmatprep.subr.bf16.mxu0 %v1509_v8  ;;  %v1536_v44 = vld [vmem:[#allocation5 + $0xd4] ss:$8 sps:$4 sm:$0xff]   ;;  %v1568_v45 = vld [vmem:[#allocation7 + $0x70] ss:$8 sps:$4 sm:$0xff]   ;;  %v1539_v47 = vld [vmem:[#allocation5 + $0xe4] ss:$8 sps:$4 sm:$0xff]  }
  0x96   : > { %844 = vmatpush1.bf16.msra.mxu1 %v1553_v25  ;;  %v1538_v46 = vld [vmem:[#allocation5 + $0xd0] ss:$8 sps:$4 sm:$0xff]   ;;  %v1541_v48 = vld [vmem:[#allocation5 + $0xe0] ss:$8 sps:$4 sm:$0xff]   ;;  %v1542_v49 = vld [vmem:[#allocation5 + $0xf4] ss:$8 sps:$4 sm:$0xff]  }
  0x97   : > { %845 = vmatprep.subr.bf16.mxu1 %v1554_v27  ;;  %v1544_v50 = vld [vmem:[#allocation5 + $0xf0] ss:$8 sps:$4 sm:$0xff]   ;;  %v1569_v54 = vld [vmem:[#allocation7 + $0x84] ss:$8 sps:$4 sm:$0xff]   ;;  %v1571_v55 = vld [vmem:[#allocation7 + $0x80] ss:$8 sps:$4 sm:$0xff]  }
  0x98   : > { %563 = vmatpush1.bf16.msra.mxu0 %v1511_v9  ;;  %v2132_v52 = vld [vmem:[%s2106_s20 + $0x10] sm:$0xff]  ;;  %v1575_v58 = vld [vmem:[#allocation7 + $0xa4] ss:$8 sps:$4 sm:$0xff]   ;;  %v1577_v59 = vld [vmem:[#allocation7 + $0xa0] ss:$8 sps:$4 sm:$0xff]   ;;  %s1190_s29 = sshll.u32 %s341_s15, 4  ;;  %s2162_s29 = int_to_ptr.vmem [resolvable:$true] %s1190_s29 }
  0x99   : > { %564 = vmatprep.subr.bf16.mxu0 %v1512_v10  ;;  %v381_v53 = vpack.c.bf16 %v2132_v52, %v2129_v51  ;;  %v1572_v56 = vld [vmem:[#allocation7 + $0x94] ss:$8 sps:$4 sm:$0xff]   ;;  %v1574_v57 = vld [vmem:[#allocation7 + $0x90] ss:$8 sps:$4 sm:$0xff]   ;;  %v1581_v62 = vld [vmem:[#allocation7 + $0xc4] ss:$8 sps:$4 sm:$0xff]  }
  0x9a   : > { %846 = vmatpush1.bf16.msra.mxu1 %v1556_v30  ;;  %v1578_v60 = vld [vmem:[#allocation7 + $0xb4] ss:$8 sps:$4 sm:$0xff]   ;;  %v1580_v61 = vld [vmem:[#allocation7 + $0xb0] ss:$8 sps:$4 sm:$0xff]   ;;  %v1583_v63 = vld [vmem:[#allocation7 + $0xc0] ss:$8 sps:$4 sm:$0xff]  }
  0x9b   : > { %847 = vmatprep.subr.bf16.mxu1 %v1557_v31  ;;  %v1584_v0 = vld [vmem:[#allocation7 + $0xd4] ss:$8 sps:$4 sm:$0xff]   ;;  %v1586_v1 = vld [vmem:[#allocation7 + $0xd0] ss:$8 sps:$4 sm:$0xff]   ;;  %v1587_v2 = vld [vmem:[#allocation7 + $0xe4] ss:$8 sps:$4 sm:$0xff]  }
  0x9c   : > { %565 = vmatpush1.bf16.msra.mxu0 %v1514_v11  ;;  %v1589_v3 = vld [vmem:[#allocation7 + $0xe0] ss:$8 sps:$4 sm:$0xff]   ;;  %v1590_v4 = vld [vmem:[#allocation7 + $0xf4] ss:$8 sps:$4 sm:$0xff]   ;;  %v1592_v5 = vld [vmem:[#allocation7 + $0xf0] ss:$8 sps:$4 sm:$0xff]  }
  0x9d   : > { %566 = vmatprep.subr.bf16.mxu0 %v1515_v12  ;;  %v1593_v6 = vld [vmem:[#allocation8] ss:$8 sps:$4 sm:$0xff]   ;;  %v1595_v7 = vld [vmem:[#allocation8 + $0x4] ss:$8 sps:$4 sm:$0xff]   ;;  %v1598_v8 = vld [vmem:[#allocation8 + $0x14] ss:$8 sps:$4 sm:$0xff]  }
  0x9e   : > { %848 = vmatpush1.bf16.msra.mxu1 %v1559_v33  ;;  %v1596_v9 = vld [vmem:[#allocation8 + $0x10] ss:$8 sps:$4 sm:$0xff]   ;;  %v1601_v10 = vld [vmem:[#allocation8 + $0x24] ss:$8 sps:$4 sm:$0xff]   ;;  %v1599_v11 = vld [vmem:[#allocation8 + $0x20] ss:$8 sps:$4 sm:$0xff]  }
  0x9f   : > { %849 = vmatprep.subr.bf16.mxu1 %v1560_v35  ;;  %v1604_v12 = vld [vmem:[#allocation8 + $0x34] ss:$8 sps:$4 sm:$0xff]   ;;  %v1605_v17 = vld [vmem:[#allocation8 + $0x40] ss:$8 sps:$4 sm:$0xff]   ;;  %v1608_v19 = vld [vmem:[#allocation8 + $0x50] ss:$8 sps:$4 sm:$0xff]  }
  0xa0   : > { %567 = vmatpush1.bf16.msra.mxu0 %v1517_v15  ;;  %v1602_v15 = vld [vmem:[#allocation8 + $0x30] ss:$8 sps:$4 sm:$0xff]   ;;  %v1610_v18 = vld [vmem:[#allocation8 + $0x54] ss:$8 sps:$4 sm:$0xff]   ;;  %v1613_v20 = vld [vmem:[#allocation8 + $0x64] ss:$8 sps:$4 sm:$0xff]  }
  0xa1   : > { %568 = vmatprep.subr.bf16.mxu0 %v1518_v16  ;;  %v1607_v16 = vld [vmem:[#allocation8 + $0x44] ss:$8 sps:$4 sm:$0xff]   ;;  %v1611_v21 = vld [vmem:[#allocation8 + $0x60] ss:$8 sps:$4 sm:$0xff]   ;;  %s1176_s28 = scalar_lea.sflag [#allocation4], %s2100_s21  ;;  %s1771_s13 = scalar_lea.vmem %s2162_s29, 512 }
  0xa2   : > { %850 = vmatpush1.bf16.msra.mxu1 %v1562_v37  ;;  %v380_v25 = vld [vmem:[%s2213_s2] sm:$0x3]  ;;  %p1772_p10 = scmp.ne.s32.totalorder %s2162_s29, %s1771_s13  ;;  %s1855_s20 = smov [#allocation10]  }
  0xa3   : > { %851 = vmatprep.subr.bf16.mxu1 %v1563_v39  ;;  %s1775_s30 = sshll.u32 %s1855_s20, 4  ;;  %s1776_s30 = int_to_ptr.vmem [resolvable:$false] %s1775_s30 }
  0xa4   : > { %569 = vmatpush1.bf16.msra.mxu0 %v1520_v22  ;;  %v384_v22 = vlaneseq  ;;  %p1773_p3 = pnand %p1772_p10, %p2052_p5  ;;  %s1777_s9 = scalar_lea.vmem %s1776_s30, 1024 }
  0xa5   : > { %570 = vmatprep.subr.bf16.mxu0 %v1521_v24  ;;  %p1778_p12 = scmp.lt.s32.totalorder %s2162_s29, %s1776_s30  ;;  %p1779_p1 = scmp.lt.s32.totalorder %s1777_s9, %s1771_s13 }
  0xa6   : > { %852 = vmatpush1.bf16.msra.mxu1 %v1565_v41  ;;  %v385_v23 = vshrl.u32 %v384_v22, 7  ;;  %v1623_v22 = vld [vmem:[#allocation8 + $0xa0] ss:$8 sps:$4 sm:$0xff]   ;;  %p1774_p7 = pneg %p1773_p3 }
  0xa7   : > { %853 = vmatprep.subr.bf16.mxu1 %v1566_v43  ;;  %p1780_p2 = por %p1779_p1, %p1778_p12 }
  0xa8   : > { %571 = vmatpush1.bf16.msra.mxu0 %v1523_v26  ;;  %v2136_v24 = vsub.s32 0, %v385_v23  ;;  %v2141_v26 = vsub.s32 1, %v385_v23  ;;  %v1628_v23 = vld [vmem:[#allocation8 + $0xb4] ss:$8 sps:$4 sm:$0xff]  }
  0xa9   : > { %572 = vmatprep.subr.bf16.mxu0 %v1524_v28  ;;  %p1781_p4 = pnand %p1780_p2, %p1774_p7 }
  0xaa   : > { %854 = vmatpush1.bf16.msra.mxu1 %v1568_v45  ;;  %v387_v27 = vrot.slane %v380_v25, %v2136_v24  ;;  %v391_v28 = vrot.slane %v380_v25, %v2141_v26  ;;  %v1626_v25 = vld [vmem:[#allocation8 + $0xb0] ss:$8 sps:$4 sm:$0xff]  }
  0xab   : > { %855 = vmatprep.subr.bf16.mxu1 %v1569_v54 }
  0xac   : > { %573 = vmatpush1.bf16.msra.mxu0 %v1526_v29 }
  0xad   : > { %574 = vmatprep.subr.bf16.mxu0 %v1527_v32 }
  0xae   : > { %856 = vmatpush1.bf16.msra.mxu1 %v1571_v55 }
  0xaf   : > { %857 = vmatprep.subr.bf16.mxu1 %v1572_v56 }
  0xb0   : > { %575 = vmatpush1.bf16.msra.mxu0 %v1529_v34 }
  0xb1   : > { %576 = vmatprep.subr.bf16.mxu0 %v1530_v36 }
  0xb2   : > { %858 = vmatpush1.bf16.msra.mxu1 %v1574_v57 }
  0xb3   : > { %859 = vmatprep.subr.bf16.mxu1 %v1575_v58 }
  0xb4   : > { %577 = vmatpush1.bf16.msra.mxu0 %v1532_v38 }
  0xb5   : > { %578 = vmatprep.subr.bf16.mxu0 %v1533_v40 }
  0xb6   : > { %860 = vmatpush1.bf16.msra.mxu1 %v1577_v59 }
  0xb7   : > { %861 = vmatprep.subr.bf16.mxu1 %v1578_v60 }
  0xb8   : > { %579 = vmatpush1.bf16.msra.mxu0 %v1535_v42 }
  0xb9   : > { %580 = vmatprep.subr.bf16.mxu0 %v1536_v44 }
  0xba   : > { %862 = vmatpush1.bf16.msra.mxu1 %v1580_v61 }
  0xbb   : > { %863 = vmatprep.subr.bf16.mxu1 %v1581_v62 }
  0xbc   : > { %581 = vmatpush1.bf16.msra.mxu0 %v1538_v46 }
  0xbd   : > { %582 = vmatprep.subr.bf16.mxu0 %v1539_v47 }
  0xbe   : > { %864 = vmatpush1.bf16.msra.mxu1 %v1583_v63 }
  0xbf   : > { %865 = vmatprep.subr.bf16.mxu1 %v1584_v0 }
  0xc0   : > { %583 = vmatpush1.bf16.msra.mxu0 %v1541_v48 }
  0xc1   : > { %584 = vmatprep.subr.bf16.mxu0 %v1542_v49 }
  0xc2   : > { %866 = vmatpush1.bf16.msra.mxu1 %v1586_v1 }
  0xc3   : > { %867 = vmatprep.subr.bf16.mxu1 %v1587_v2 }
  0xc4   : > { %585 = vmatpush1.bf16.msra.mxu0 %v1544_v50 }
  0xc5   : > { %1128 = vmatprep.subr.bf16.mxu0 %v1595_v7 }
  0xc6   : > { %868 = vmatpush1.bf16.msra.mxu1 %v1589_v3 }
  0xc7   : > { %587 = vmatmul.mubr.bf16.vlgmr.msra.gmra.mrb[0].mxu0 %v381_v53  ;;  %869 = vmatprep.subr.bf16.mxu1 %v1590_v4 }
  0xc8   : > { %1129 = vmatpush1.bf16.msra.mxu0 %v1593_v6 }
  0xc9   : > { %1130 = vmatprep.subr.bf16.mxu0 %v1598_v8 }
  0xca   : > { %870 = vmatpush1.bf16.msra.mxu1 %v1592_v5 }
  0xcc   : > { %1131 = vmatpush1.bf16.msra.mxu0 %v1596_v9 }
  0xcd   : > { %1132 = vmatprep.subr.bf16.mxu0 %v1601_v10 }
  0xd0   : > { %1133 = vmatpush1.bf16.msra.mxu0 %v1599_v11 }
  0xd1   : > { %1134 = vmatprep.subr.bf16.mxu0 %v1604_v12 }
  0xd4   : > { %1135 = vmatpush1.bf16.msra.mxu0 %v1602_v15  ;;  %v1616_v15 = vld [vmem:[#allocation8 + $0x74] ss:$8 sps:$4 sm:$0xff]  }
  0xd5   : > { %1136 = vmatprep.subr.bf16.mxu0 %v1607_v16  ;;  %v1614_v16 = vld [vmem:[#allocation8 + $0x70] ss:$8 sps:$4 sm:$0xff]  }
  0xd8   : > { %1137 = vmatpush1.bf16.msra.mxu0 %v1605_v17  ;;  %v1619_v17 = vld [vmem:[#allocation8 + $0x84] ss:$8 sps:$4 sm:$0xff]  }
  0xd9   : > { %1138 = vmatprep.subr.bf16.mxu0 %v1610_v18  ;;  %v1617_v18 = vld [vmem:[#allocation8 + $0x80] ss:$8 sps:$4 sm:$0xff]  }
  0xdc   : > { %1139 = vmatpush1.bf16.msra.mxu0 %v1608_v19  ;;  %v1622_v19 = vld [vmem:[#allocation8 + $0x94] ss:$8 sps:$4 sm:$0xff]  }
  0xdd   : > { %1140 = vmatprep.subr.bf16.mxu0 %v1613_v20  ;;  %v1620_v20 = vld [vmem:[#allocation8 + $0x90] ss:$8 sps:$4 sm:$0xff]  }
  0xe0   : > { %1141 = vmatpush1.bf16.msra.mxu0 %v1611_v21  ;;  %v1625_v21 = vld [vmem:[#allocation8 + $0xa4] ss:$8 sps:$4 sm:$0xff]  }
  0xe1   : > { %1142 = vmatprep.subr.bf16.mxu0 %v1616_v15 }
  0xe4   : > { %1143 = vmatpush1.bf16.msra.mxu0 %v1614_v16 }
  0xe5   : > { %1144 = vmatprep.subr.bf16.mxu0 %v1619_v17 }
  0xe8   : > { %1145 = vmatpush1.bf16.msra.mxu0 %v1617_v18 }
  0xe9   : > { %1146 = vmatprep.subr.bf16.mxu0 %v1622_v19 }
  0xec   : > { %1147 = vmatpush1.bf16.msra.mxu0 %v1620_v20 }
  0xed   : > { %1148 = vmatprep.subr.bf16.mxu0 %v1625_v21 }
  0xf0   : > { %1149 = vmatpush1.bf16.msra.mxu0 %v1623_v22 }
  0xf1   : > { %1150 = vmatprep.subr.bf16.mxu0 %v1628_v23 }
  0xf4   : > { %1151 = vmatpush1.bf16.msra.mxu0 %v1626_v25 }
 0x19a   : > { %v588_v29 = vpop.f32.mrb[0].mxu0 }
 0x19b   : > { %v589_v30 = vadd.f32 %v588_v29, %v387_v27  ;;  %v590_v31 = vpop.f32.mrb[1].mxu0  ;;  %v1634_v29 = vld [vmem:[#allocation8 + $0xd4] ss:$8 sps:$4 sm:$0xff]  }
 0x19c   : > { %v591_v32 = vadd.f32 %v590_v31, %v391_v28  ;;  %v592_v33 = vpop.f32.mrb[2].mxu0  ;;  %v1637_v31 = vld [vmem:[#allocation8 + $0xe4] ss:$8 sps:$4 sm:$0xff]  }
 0x19d   : > { %v601_v34 = vmul.f32 0.044715, %v589_v30  ;;  %v593_v35 = vadd.f32 %v592_v33, %v387_v27  ;;  %v594_v36 = vpop.f32.mrb[3].mxu0  ;;  %v597_v1 = vmul.f32 0.5, %v589_v30  ;;  %v1631_v27 = vld [vmem:[#allocation8 + $0xc4] ss:$8 sps:$4 sm:$0xff]  }
 0x19e   : > { %v602_v37 = vmul.f32 0.044715, %v591_v32  ;;  %v595_v38 = vadd.f32 %v594_v36, %v391_v28  ;;  %v598_v4 = vmul.f32 0.5, %v591_v32  ;;  %v1629_v28 = vld [vmem:[#allocation8 + $0xc0] ss:$8 sps:$4 sm:$0xff]   ;;  %1152 = vmatprep.subr.bf16.mxu0 %v1631_v27 }
 0x19f   : > { %v605_v39 = vmul.f32 %v601_v34, %v589_v30  ;;  %v603_v40 = vmul.f32 0.044715, %v593_v35  ;;  %v599_v2 = vmul.f32 0.5, %v593_v35  ;;  %1153 = vmatpush1.bf16.msra.mxu0 %v1629_v28  ;;  %v1640_v33 = vld [vmem:[#allocation8 + $0xf4] ss:$8 sps:$4 sm:$0xff]  }
 0x1a0   : > { %v604_v41 = vmul.f32 0.044715, %v595_v38  ;;  %v606_v42 = vmul.f32 %v602_v37, %v591_v32  ;;  %v600_v5 = vmul.f32 0.5, %v595_v38  ;;  %1154 = vmatprep.subr.bf16.mxu0 %v1634_v29  ;;  %v1638_v34 = vld [vmem:[#allocation8 + $0xf0] ss:$8 sps:$4 sm:$0xff]  }
 0x1a1   : > { %v609_v43 = vmul.f32 %v605_v39, %v589_v30  ;;  %v607_v44 = vmul.f32 %v603_v40, %v593_v35 }
 0x1a2   : > { %v608_v45 = vmul.f32 %v604_v41, %v595_v38  ;;  %v610_v46 = vmul.f32 %v606_v42, %v591_v32 }
 0x1a3   : > { %v611_v47 = vmul.f32 %v607_v44, %v593_v35  ;;  %v613_v48 = vadd.f32 %v609_v43, %v589_v30  ;;  %v1632_v30 = vld [vmem:[#allocation8 + $0xd0] ss:$8 sps:$4 sm:$0xff]  }
 0x1a4   : > { %v612_v49 = vmul.f32 %v608_v45, %v595_v38  ;;  %v614_v50 = vadd.f32 %v610_v46, %v591_v32  ;;  %1155 = vmatpush1.bf16.msra.mxu0 %v1632_v30  ;;  %v1635_v32 = vld [vmem:[#allocation8 + $0xe0] ss:$8 sps:$4 sm:$0xff]  }
 0x1a5   : > { %v615_v53 = vadd.f32 %v611_v47, %v593_v35  ;;  %v617_v54 = vmul.f32 0.7978846, %v613_v48  ;;  %1156 = vmatprep.subr.bf16.mxu0 %v1637_v31  ;;  %v665_v35 = vld [vmem:[%s2215_s4] sm:$0x3] }
 0x1a6   : > { %v616_v55 = vadd.f32 %v612_v49, %v595_v38  ;;  %v618_v56 = vmul.f32 0.7978846, %v614_v50  ;;  %v672_v36 = vrot.slane %v665_v35, %v2136_v24  ;;  %v676_v37 = vrot.slane %v665_v35, %v2141_v26  ;;  %v954_v30 = vld [vmem:[%s2217_s6] sm:$0x3] }
 0x1a7   : > { %v619_v57 = vmul.f32 0.7978846, %v615_v53  ;;  %1641 = vtanh.f32 %v617_v54  ;;  %v961_v31 = vrot.slane %v954_v30, %v2136_v24 }
 0x1a8   : > { %v620_v58 = vmul.f32 0.7978846, %v616_v55  ;;  %1643 = vtanh.f32 %v618_v56  ;;  %1157 = vmatpush1.bf16.msra.mxu0 %v1635_v32  ;;  %v965_v32 = vrot.slane %v954_v30, %v2141_v26 }
 0x1a9   : > { %1645 = vtanh.f32 %v619_v57  ;;  %1158 = vmatprep.subr.bf16.mxu0 %v1640_v33 }
 0x1aa   : > { %1647 = vtanh.f32 %v620_v58 }
 0x1ac   : > { %1159 = vmatpush1.bf16.msra.mxu0 %v1638_v34 }
 0x1b1   : > { %v1642_v59 = vpop.eup %1641 }
 0x1b2   : > { %v1644_v60 = vpop.eup %1643  ;;  %v625_v61 = vadd.f32 1.0, %v1642_v59 }
 0x1b3   : > { %v1646_v62 = vpop.eup %1645  ;;  %v626_v63 = vadd.f32 1.0, %v1644_v60 }
 0x1b4   : > { %v1648_v0 = vpop.eup %1647  ;;  %v627_v3 = vadd.f32 1.0, %v1646_v62  ;;  %v629_v7 = vmul.f32 %v625_v61, %v597_v1 }
 0x1b5   : > { %v628_v6 = vadd.f32 1.0, %v1648_v0  ;;  %v630_v9 = vmul.f32 %v626_v63, %v598_v4 }
 0x1b6   : > { %v631_v8 = vmul.f32 %v627_v3, %v599_v2 }
 0x1b7   : > { %v632_v10 = vmul.f32 %v628_v6, %v600_v5 }
 0x1b8   : > { %v666_v11 = vpack.c.bf16 %v631_v8, %v629_v7 }
 0x1b9   : > { %v667_v12 = vpack.c.bf16 %v632_v10, %v630_v9 }
 0x1bb   : > { %871 = vmatprep.mubr.bf16.mxu1 %v667_v12 }
 0x1bc   : > { %872 = vmatmul.mubr.bf16.vlgmr.msra.gmra.mrb[0].mxu1 %v666_v11 }
 0x28f   : > { %v873_v38 = vpop.f32.mrb[0].mxu1 }
 0x290   : > { %v874_v39 = vadd.f32 %v873_v38, %v672_v36  ;;  %v875_v40 = vpop.f32.mrb[1].mxu1 }
 0x291   : > { %v876_v41 = vadd.f32 %v875_v40, %v676_v37  ;;  %v877_v42 = vpop.f32.mrb[2].mxu1 }
 0x292   : > { %v886_v43 = vmul.f32 0.044715, %v874_v39  ;;  %v878_v44 = vadd.f32 %v877_v42, %v672_v36  ;;  %v879_v45 = vpop.f32.mrb[3].mxu1  ;;  %v882_v6 = vmul.f32 0.5, %v874_v39 }
 0x293   : > { %v887_v46 = vmul.f32 0.044715, %v876_v41  ;;  %v880_v47 = vadd.f32 %v879_v45, %v676_v37  ;;  %v883_v9 = vmul.f32 0.5, %v876_v41 }
 0x294   : > { %v890_v48 = vmul.f32 %v886_v43, %v874_v39  ;;  %v888_v49 = vmul.f32 0.044715, %v878_v44  ;;  %v884_v12 = vmul.f32 0.5, %v878_v44 }
 0x295   : > { %v891_v50 = vmul.f32 %v887_v46, %v876_v41  ;;  %v889_v53 = vmul.f32 0.044715, %v880_v47  ;;  %v885_v17 = vmul.f32 0.5, %v880_v47 }
 0x296   : > { %v894_v54 = vmul.f32 %v890_v48, %v874_v39  ;;  %v892_v55 = vmul.f32 %v888_v49, %v878_v44 }
 0x297   : > { %v895_v56 = vmul.f32 %v891_v50, %v876_v41  ;;  %v893_v57 = vmul.f32 %v889_v53, %v880_v47 }
 0x298   : > { %v898_v58 = vadd.f32 %v894_v54, %v874_v39  ;;  %v896_v59 = vmul.f32 %v892_v55, %v878_v44 }
 0x299   : > { %v899_v60 = vadd.f32 %v895_v56, %v876_v41  ;;  %v897_v61 = vmul.f32 %v893_v57, %v880_v47 }
 0x29a   : > { %v902_v62 = vmul.f32 0.7978846, %v898_v58  ;;  %v900_v63 = vadd.f32 %v896_v59, %v878_v44 }
 0x29b   : > { %v901_v0 = vadd.f32 %v897_v61, %v880_v47  ;;  %v903_v1 = vmul.f32 0.7978846, %v899_v60 }
 0x29c   : > { %1649 = vtanh.f32 %v902_v62  ;;  %v904_v2 = vmul.f32 0.7978846, %v900_v63 }
 0x29d   : > { %v905_v3 = vmul.f32 0.7978846, %v901_v0  ;;  %1651 = vtanh.f32 %v903_v1 }
 0x29e   : > { %1653 = vtanh.f32 %v904_v2 }
 0x29f   : > { %1655 = vtanh.f32 %v905_v3 }
 0x2a6   : > { %v1650_v4 = vpop.eup %1649 }
 0x2a7   : > { %v1652_v5 = vpop.eup %1651  ;;  %v910_v7 = vadd.f32 1.0, %v1650_v4 }
 0x2a8   : > { %v1654_v8 = vpop.eup %1653  ;;  %v911_v10 = vadd.f32 1.0, %v1652_v5 }
 0x2a9   : > { %v1656_v11 = vpop.eup %1655  ;;  %v912_v15 = vadd.f32 1.0, %v1654_v8  ;;  %v914_v16 = vmul.f32 %v910_v7, %v882_v6 }
 0x2aa   : > { %v913_v18 = vadd.f32 1.0, %v1656_v11  ;;  %v915_v19 = vmul.f32 %v911_v10, %v883_v9 }
 0x2ab   : > { %v916_v20 = vmul.f32 %v912_v15, %v884_v12  ;;  %v918_v22 = vadd.f32 %v914_v16, %v2129_v51 }
 0x2ac   : > { %v917_v21 = vmul.f32 %v913_v18, %v885_v17  ;;  %v919_v25 = vadd.f32 %v915_v19, %v2121_v13 }
 0x2ad   : > { %v920_v23 = vadd.f32 %v916_v20, %v2132_v52 }
 0x2ae   : > { %v921_v27 = vadd.f32 %v917_v21, %v2124_v14 }
 0x2af   : > { %v955_v28 = vpack.c.bf16 %v920_v23, %v918_v22 }
 0x2b0   : > { %v956_v29 = vpack.c.bf16 %v921_v27, %v919_v25 }
 0x2b2   : > { %1160 = vmatprep.mubr.bf16.mxu0 %v956_v29 }
 0x2b3   : > { %1161 = vmatmul.mubr.bf16.vlgmr.msra.gmra.mrb[4].mxu0 %v955_v28 }
 0x386   : > { %v1162_v51 = vpop.f32.mrb[4].mxu0 }
 0x387   : > { %v1163_v13 = vadd.f32 %v1162_v51, %v961_v31  ;;  %v1164_v14 = vpop.f32.mrb[5].mxu0 }
 0x388   : > { %v1165_v52 = vadd.f32 %v1164_v14, %v965_v32  ;;  %v1166_v33 = vpop.f32.mrb[6].mxu0 }
 0x389   : > { %1171 = vst [vmem:[%s341_s15] sm:$0xff] %v1163_v13  ;;  %v1167_v34 = vadd.f32 %v1166_v33, %v961_v31  ;;  %v1168_v24 = vpop.f32.mrb[7].mxu0 }
 0x38a   : > { %1172 = vst [vmem:[%s341_s15 + $0x8] sm:$0xff] %v1165_v52  ;;  %v1169_v26 = vadd.f32 %v1168_v24, %v965_v32 }
 0x38b   : > { %1173 = vst [vmem:[%s341_s15 + $0x10] sm:$0xff] %v1167_v34 }
 0x38c   : > { %1174 = vst [vmem:[%s341_s15 + $0x18] sm:$0xff] %v1169_v26 }
 0x38d   : > { %1784 = shalt.err (!%p1781_p4)
}
 0x38e   : > { %s1785_s23 = scalar_lea.hbm %s2167_s16, 512  ;;  %s1789_s14 = scalar_lea.hbm %s2218_s7, 1024 }
 0x38f   : > { %p1786_p9 = scmp.ne.s32.totalorder %s2167_s16, %s1785_s23  ;;  %p1790_p8 = scmp.lt.u32.totalorder %s2167_s16, %s2218_s7 }
 0x390   : > { %p1791_p13 = scmp.lt.u32.totalorder %s1789_s14, %s1785_s23  ;;  %p1793_p10 = scmp.lt.u32.totalorder %s1785_s23, %s2167_s16 }
 0x391   : > { %p1787_p0 = pnand %p1786_p9, %p2052_p5 }
 0x392   : > { %p1792_p6 = por %p1791_p13, %p1790_p8 }
 0x393   : > { %p1788_p11 = pneg %p1787_p0 }
 0x394   : > { %p1794_p3 = por %p1793_p10, %p1792_p6 }
 0x396   : > { %p1795_p7 = pnand %p1794_p3, %p1788_p11 }
 0x398   : > { %1798 = shalt.err (!%p1795_p7)
}
 0x399   : > { %s1856_s8 = smov 256   ;;  %s1857_s17 = smov 16  }
 0x39a   : > { %1428 = dma.vmem_to_hbm [thread:$0]  (%p2052_p5), %s2162_s29, 512, %s2167_s16, %s1176_s28, %s1856_s8, %s1856_s8, %s1857_s17  }
 0x39b PF: > { %s2238_s13 = sld [smem:[#allocation15_spill]]  ;;  %s1205_s20 = sand.u32 1, %s1833_s24  }
 0x39c   : > { %p2240_p1 = scmp.ge.s32.totalorder %s1845_s27, 2  ;;  %s1206_s30 = scalar_lea.sflag [#allocation4], %s1205_s20 }
 0x3a1   : > { %p2239_p12 = scmp.ne.s32.totalorder %s2238_s13, 0 }
 0x3a3   : > { %p1445_p2 = pnand %p2240_p1, %p2239_p12 }
 0x3a5   : > { %1828 = dma.done.wait (!%p1445_p2), %s1206_s30, 512  }
 0x3a6   : > { %1830 = vsyncadd (!%p1445_p2), %s1206_s30, 4294966784  ;;  %p22_p4 = scmp.ge.s32.totalorder %s2038_s22, 4   ;;  %s2241_s24 = smov %s1837_s25 }
 0x3a7   : > { %s2242_s25 = smov %s1841_s26  ;;  %s2243_s26 = smov %s2048_s18 }
 0x3a8   : > { %s2244_s27 = smov %s2038_s22  ;;  %24 = sbr.rel (!%p22_p4) target bundleno = 7 (0x7), region = 105 }
 0x3af   :  { %1211 = vsyncpa [#allocation3], 1 }
 0x3b0   :  { %1213 = vsyncpa [#allocation3 + $0x1], 1 }
 0x3b1   :  { %1214 = vsyncpa [#allocation6], 1 }
 0x3b2   :  { %1215 = vsyncpa [#allocation9], 1 }
 0x3b3   :  { %1216 = vsyncpa [#allocation4], 1 }
 0x3b4   :  { %1218 = vsyncpa [#allocation4 + $0x1], 1 }

</bundles_post_ra>
